<compile_context>
chip_gen: v7x
topology: tpu7x:2x2x1
jax: 0.10.0
libtpu: 0.0.40
codegen_flags: <defaults>
</compile_context>

<pallas_src>
import math

import jax
import jax.numpy as jnp
from jax.experimental import pallas as pl
from jax.experimental.pallas import tpu as pltpu

MARGIN = 0.2

_LANES = 128
_SUBLANES = 8
_SMALL_ROWS = 512                       # <= this many rows -> single grid step
_TARGET_BLOCK_BYTES = 4 * 1024 * 1024   # ~4 MiB per array per tile
_MAX_VIEW_COLS = 131072                 # widest un-flattened last dim we tile directly
_VMEM_LIMIT_BYTES = 48 * 1024 * 1024    # fits v5e/v6e (128 MiB) and v7x (64 MiB) physical


def _round_up(x, m):
    return -(-x // m) * m


def _triplet_loss_kernel(margin_ref, sn_ref, sp_ref, out_ref):
    # relu(sn - sp + margin), elementwise on the whole VMEM tile.
    m = margin_ref[0]                               # scalar from SMEM
    out_ref[...] = jnp.maximum(sn_ref[...] - sp_ref[...] + m, 0.0).astype(out_ref.dtype)


def _launch(sn2, sp2, margin_arr, *, allow_input_fusion=False):
    """Run the kernel on a 2-D (rows, cols) view.  rows/cols need not be aligned;
    ragged row tails / lanes are handled by Pallas' masked partial blocks."""
    rows, cols = sn2.shape
    dtype = sn2.dtype
    itemsize = sn2.dtype.itemsize

    # Tile sizing from the VMEM footprint of one block (lane-padded width).
    padded_cols = _round_up(cols, _LANES)
    row_bytes = padded_cols * itemsize
    max_rows_by_vmem = max(_SUBLANES,
                           (_TARGET_BLOCK_BYTES // row_bytes) // _SUBLANES * _SUBLANES)

    if rows > _SMALL_ROWS:
        # At least 2 grid steps so v7x can shard rows across its 2 TensorCores,
        # capped at ~4 MiB/array/block (past the measured roofline knee on all gens).
        block_rows = min(max_rows_by_vmem, _round_up(-(-rows // 2), _SUBLANES))
    else:
        # Tiny input: one block.  (block_rows == rows is always a legal block dim.)
        block_rows = rows if rows <= max_rows_by_vmem else max_rows_by_vmem
    num_blocks = -(-rows // block_rows)

    n_elems = rows * cols
    cost = pl.CostEstimate(flops=2 * n_elems, transcendentals=0,
                           bytes_accessed=3 * n_elems * itemsize)

    cp_kwargs = dict(dimension_semantics=("parallel",),
                     vmem_limit_bytes=_VMEM_LIMIT_BYTES)
    if allow_input_fusion:
        # Let XLA fuse the pad/reshape producers into the pallas_call operands
        # (margin scalar excluded).
        cp_kwargs["allow_input_fusion"] = [False, True, True]

    return pl.pallas_call(
        _triplet_loss_kernel,
        out_shape=jax.ShapeDtypeStruct((rows, cols), dtype),
        grid=(num_blocks,),
        in_specs=[
            pl.BlockSpec(memory_space=pltpu.MemorySpace.SMEM),       # margin scalar
            pl.BlockSpec((block_rows, cols), lambda i: (i, 0)),      # sn
            pl.BlockSpec((block_rows, cols), lambda i: (i, 0)),      # sp
        ],
        out_specs=pl.BlockSpec((block_rows, cols), lambda i: (i, 0)),
        compiler_params=pltpu.CompilerParams(**cp_kwargs),
        cost_estimate=cost,
    )(margin_arr, sn2, sp2)


def triplet_loss(sn, sp, margin=MARGIN):
    assert sn.shape == sp.shape and sn.dtype == sp.dtype
    orig_shape = sn.shape
    dtype = sn.dtype
    n = int(math.prod(orig_shape)) if orig_shape else 1

    if n == 0:
        return jnp.zeros(orig_shape, dtype)

    margin_arr = jnp.asarray([margin], dtype=jnp.float32)

    # ---- Zero-copy 2-D views (no jnp.pad, no output slice) ----------------
    if n % _LANES == 0:
        # Perfect lane-dense slab (n/128, 128): unmasked vst, best case.
        sn2 = sn.reshape(n // _LANES, _LANES)
        sp2 = sp.reshape(n // _LANES, _LANES)
        return _launch(sn2, sp2, margin_arr).reshape(orig_shape)

    if len(orig_shape) >= 2 and orig_shape[-1] <= _MAX_VIEW_COLS:
        # Ragged last dim: collapse leading dims and tile the original last dim
        # full-width.  Partial-lane stores cost far less than extra HBM passes
        # from padding/slicing the whole array.
        cols = orig_shape[-1]
        sn2 = sn.reshape(n // cols, cols)
        sp2 = sp.reshape(n // cols, cols)
        return _launch(sn2, sp2, margin_arr).reshape(orig_shape)

    if len(orig_shape) <= 1 and n <= _MAX_VIEW_COLS:
        # Small ragged 1-D / 0-D: single row.
        sn2 = sn.reshape(1, n)
        sp2 = sp.reshape(1, n)
        return _launch(sn2, sp2, margin_arr).reshape(orig_shape)

    # ---- Fallback (huge ragged 1-D only): pad to a lane-dense slab --------
    # allow_input_fusion lets XLA fold the pad/reshape into the kernel inputs
    # instead of materializing padded copies in HBM.
    n_pad = _round_up(n, _LANES)
    sn2 = jnp.pad(sn.reshape(-1), (0, n_pad - n)).reshape(n_pad // _LANES, _LANES)
    sp2 = jnp.pad(sp.reshape(-1), (0, n_pad - n)).reshape(n_pad // _LANES, _LANES)
    out2 = _launch(sn2, sp2, margin_arr, allow_input_fusion=True)
    return out2.reshape(-1)[:n].reshape(orig_shape)


def triplet_loss_ref(sn, sp, margin=MARGIN):
    return jnp.maximum(sn - sp + margin, 0.0)


if __name__ == "__main__":
    key = jax.random.PRNGKey(0)
    k1, k2, k3, k4, k5, k6 = jax.random.split(key, 6)

    # Small demo consistent with the module: batch=8 rows of 128 pair scores.
    B, D = 8, 128
    sn = jax.random.normal(k1, (B, D), dtype=jnp.float32)   # "negative" sims
    sp = jax.random.normal(k2, (B, D), dtype=jnp.float32)   # "positive" sims
    out = jax.block_until_ready(triplet_loss(sn, sp))
    ref = triplet_loss_ref(sn, sp)
    assert out.shape == ref.shape and out.dtype == ref.dtype
    assert jnp.allclose(out, ref, atol=1e-6), "mismatch vs reference (small, lane-dense)"

    # Ragged last dim (not a multiple of 128): zero-copy 2-D view, multi-block
    # grid with a masked partial final block.
    B2, D2 = 2500, 130
    sn2 = jax.random.normal(k3, (B2, D2), dtype=jnp.float32)
    sp2 = jax.random.normal(k4, (B2, D2), dtype=jnp.float32)
    out2 = jax.block_until_ready(triplet_loss(sn2, sp2))
    ref2 = triplet_loss_ref(sn2, sp2)
    assert out2.shape == ref2.shape and out2.dtype == ref2.dtype
    assert jnp.allclose(out2, ref2, atol=1e-6), "mismatch vs reference (ragged 2-D)"

    # Ragged 1-D input: single-row view path.
    L = 1037
    sn3 = jax.random.normal(k5, (L,), dtype=jnp.float32)
    sp3 = jax.random.normal(k6, (L,), dtype=jnp.float32)
    out3 = jax.block_until_ready(triplet_loss(sn3, sp3))
    ref3 = triplet_loss_ref(sn3, sp3)
    assert out3.shape == ref3.shape and out3.dtype == ref3.dtype
    assert jnp.allclose(out3, ref3, atol=1e-6), "mismatch vs reference (ragged 1-D)"

    print("KERNEL_OK")
</pallas_src>

<mosaic_0001>
module attributes {stable_mosaic.version = 11 : i64} {
  func.func @_triplet_loss_kernel(%arg0: i32, %arg1: memref<1xf32, #tpu.memory_space<smem>>, %arg2: memref<8x128xf32, #tpu.memory_space<vmem>>, %arg3: memref<8x128xf32, #tpu.memory_space<vmem>>, %arg4: memref<8x128xf32, #tpu.memory_space<vmem>>) attributes {dimension_semantics = [#tpu.dimension_semantics<parallel>], iteration_bounds = array<i64: 1>, scalar_prefetch = 0 : i64, scratch_operands = 0 : i64, tpu.core_type = #tpu.core_type<tc>, window_params = [{transform_indices = @transform_0, window_bounds = array<i64: 1>}, {transform_indices = @transform_1, window_bounds = array<i64: 8, 128>}, {transform_indices = @transform_2, window_bounds = array<i64: 8, 128>}, {transform_indices = @transform_3, window_bounds = array<i64: 8, 128>}]} {
    %c0 = arith.constant 0 : index
    %0 = memref.load %arg1[%c0] : memref<1xf32, #tpu.memory_space<smem>>
    %c0_0 = arith.constant 0 : index
    %c0_1 = arith.constant 0 : index
    %1 = vector.load %arg2[%c0_0, %c0_1] : memref<8x128xf32, #tpu.memory_space<vmem>>, vector<8x128xf32>
    %c0_2 = arith.constant 0 : index
    %c0_3 = arith.constant 0 : index
    %2 = vector.load %arg3[%c0_2, %c0_3] : memref<8x128xf32, #tpu.memory_space<vmem>>, vector<8x128xf32>
    %3 = arith.subf %1, %2 : vector<8x128xf32>
    %4 = vector.broadcast %0 : f32 to vector<8x128xf32>
    %5 = arith.addf %3, %4 : vector<8x128xf32>
    %cst = arith.constant 0.000000e+00 : f32
    %6 = vector.broadcast %cst : f32 to vector<8x128xf32>
    %7 = arith.maximumf %5, %6 : vector<8x128xf32>
    %c0_4 = arith.constant 0 : index
    %c0_5 = arith.constant 0 : index
    %8 = vector.load %arg4[%c0_4, %c0_5] : memref<8x128xf32, #tpu.memory_space<vmem>>, vector<8x128xf32>
    tpu.vector_store %arg4[%c0_4, %c0_5], %7 {strides = array<i32>} : memref<8x128xf32, #tpu.memory_space<vmem>>, vector<8x128xf32>,
    return
  }
  func.func @transform_0(%arg0: i32) -> i32 {
    %c0_i32 = arith.constant 0 : i32
    %c0_i32_0 = arith.constant 0 : i32
    return %c0_i32 : i32
  }
  func.func @transform_1(%arg0: i32) -> (i32, i32) {
    %c0_i32 = arith.constant 0 : i32
    %c0_i32_0 = arith.constant 0 : i32
    return %arg0, %c0_i32 : i32, i32
  }
  func.func @transform_2(%arg0: i32) -> (i32, i32) {
    %c0_i32 = arith.constant 0 : i32
    %c0_i32_0 = arith.constant 0 : i32
    return %arg0, %c0_i32 : i32, i32
  }
  func.func @transform_3(%arg0: i32) -> (i32, i32) {
    %c0_i32 = arith.constant 0 : i32
    %c0_i32_0 = arith.constant 0 : i32
    return %arg0, %c0_i32 : i32, i32
  }
}

</mosaic_0001>

<bundles_post_ra>
// kernel: tpu_custom_call.1
= control target key start
LH: loop header
LB: loop body
LE: loop exit
PB: predicated region body
PF: predicated region fallthrough
CT: control target
= control target key end

     0   :  { %9 = vsyncpa [#allocation4], 0  ;;  %s201_s0 = inlined_call_operand.<no memory space> [shape: f32[1], index: 0, kind: input, shape index: {}]   ;;  %s202_s1 = inlined_call_operand.hbm [shape: f32[8,128], index: 1, kind: input, shape index: {}]   ;;  %s203_s2 = inlined_call_operand.hbm [shape: f32[8,128], index: 2, kind: input, shape index: {}]   ;;  %s204_s3 = inlined_call_operand.hbm [shape: f32[8,128], index: 3, kind: output, shape index: {}]  }
   0x1   :  { %10 = vsyncpa [#allocation7], 0 }
   0x2   :  { %11 = vsyncpa [#allocation5], 0  ;;  %s139_s12 = smov [#allocation3]   ;;  %s140_s14 = smov [#allocation6]  }
   0x3   :  { %s20_s13 = sshll.u32 %s139_s12, 4  ;;  %s30_s15 = sshll.u32 %s140_s14, 4  ;;  %s21_s13 = int_to_ptr.vmem [resolvable:$true] %s20_s13  ;;  %s31_s15 = int_to_ptr.vmem [resolvable:$true] %s30_s15 }
   0x4   :  { %s67_s18 = scalar_lea.hbm %s202_s1, 128 }
   0x5   :  { %p68_p0 = scmp.ne.s32.totalorder %s202_s1, %s67_s18  ;;  %p71_p1 = scmp.lt.u32.totalorder %s67_s18, %s202_s1 }
   0x7   :  { %p73_p2 = pnand %p71_p1, %p68_p0 }
   0x9   :  { %76 = shalt.err (!%p73_p2)
}
   0xa   :  { %s77_s23 = scalar_lea.vmem %s21_s13, 128  ;;  %p82_p4 = scmp.lt.s32.totalorder %s21_s13, %s21_s13 }
   0xb   :  { %p78_p3 = scmp.ne.s32.totalorder %s21_s13, %s77_s23  ;;  %p83_p5 = scmp.lt.s32.totalorder %s77_s23, %s77_s23 }
   0xd   :  { %p84_p6 = por %p83_p5, %p82_p4 }
   0xf   :  { %p85_p7 = pnand %p84_p6, %p78_p3 }
  0x11   :  { %88 = shalt.err (!%p85_p7)
}
  0x12   :  { %23 = dma.hbm_to_vmem [thread:$0]  %s202_s1, 128, %s21_s13, [#allocation4]  }
  0x13   :  { %s89_s28 = scalar_lea.hbm %s203_s2, 128 }
  0x14   :  { %p90_p8 = scmp.ne.s32.totalorder %s203_s2, %s89_s28  ;;  %p93_p9 = scmp.lt.u32.totalorder %s89_s28, %s203_s2 }
  0x16   :  { %p95_p10 = pnand %p93_p9, %p90_p8 }
  0x18   :  { %98 = shalt.err (!%p95_p10)
}
  0x19   :  { %s99_s6 = scalar_lea.vmem %s31_s15, 128  ;;  %p104_p12 = scmp.lt.s32.totalorder %s31_s15, %s31_s15 }
  0x1a   :  { %p100_p11 = scmp.ne.s32.totalorder %s31_s15, %s99_s6  ;;  %p105_p13 = scmp.lt.s32.totalorder %s99_s6, %s99_s6 }
  0x1c   :  { %p106_p0 = por %p105_p13, %p104_p12 }
  0x1e   :  { %p107_p1 = pnand %p106_p0, %p100_p11 }
  0x20   :  { %110 = shalt.err (!%p107_p1)
}
  0x21   :  { %33 = dma.hbm_to_vmem [thread:$0]  %s203_s2, 128, %s31_s15, [#allocation7]  }
  0x22   :  { %133 = dma.done.wait [#allocation4], 128  }
  0x23   :  { %134 = vsyncadd [#allocation4], 4294967168 }
  0x24   :  { %135 = dma.done.wait [#allocation7], 128  }
  0x25   :  { %136 = vsyncadd [#allocation7], 4294967168  ;;  %v41_v0 = vld [vmem:[#allocation3] sm:$0xff]  ;;  %v42_v1 = vld [vmem:[#allocation6] sm:$0xff]  ;;  %v44_v2 = vstv %s201_s0  ;;  %s141_s10 = smov [#allocation8]  }
  0x26   :  { %v43_v3 = vsub.f32 %v41_v0, %v42_v1  ;;  %s54_s11 = sshll.u32 %s141_s10, 4  ;;  %s55_s11 = int_to_ptr.vmem [resolvable:$true] %s54_s11 }
  0x27   :  { %s111_s12 = scalar_lea.vmem %s55_s11, 128  ;;  %p116_p3 = scmp.lt.s32.totalorder %s55_s11, %s55_s11 }
  0x28   :  { %v45_v4 = vadd.f32 %v44_v2, %v43_v3  ;;  %p112_p2 = scmp.ne.s32.totalorder %s55_s11, %s111_s12  ;;  %p117_p4 = scmp.lt.s32.totalorder %s111_s12, %s111_s12 }
  0x2a   :  { %v46_v5 = vmax.f32 %v45_v4, 0.0  ;;  %p118_p5 = por %p117_p4, %p116_p3 }
  0x2c   :  { %47 = vst [vmem:[#allocation8] sm:$0xff] %v46_v5  ;;  %p119_p6 = pnand %p118_p5, %p112_p2 }
  0x2e   :  { %122 = shalt.err (!%p119_p6)
}
  0x2f   :  { %s123_s14 = scalar_lea.hbm %s204_s3, 128 }
  0x30   :  { %p124_p7 = scmp.ne.s32.totalorder %s204_s3, %s123_s14  ;;  %p127_p8 = scmp.lt.u32.totalorder %s123_s14, %s204_s3 }
  0x32   :  { %p129_p9 = pnand %p127_p8, %p124_p7 }
  0x34   :  { %132 = shalt.err (!%p129_p9)
}
  0x35   :  { %57 = dma.vmem_to_hbm [thread:$0]  %s55_s11, 128, %s204_s3, [#allocation5]  }
  0x36   :  { %137 = dma.done.wait [#allocation5], 128  }
  0x37   :  { %138 = vsyncadd [#allocation5], 4294967168 }
  0x38   :  { %61 = vsyncpa [#allocation4], 1 }
  0x39   :  { %62 = vsyncpa [#allocation7], 1 }
  0x3a   :  { %63 = vsyncpa [#allocation5], 1 }

</bundles_post_ra>
